<compile_context>
chip_gen: v6e
topology: v6e:2x2x1
jax: 0.10.0
libtpu: 0.0.40
codegen_flags: <defaults>
</compile_context>

<pallas_src>
import math
import functools

import jax
import jax.numpy as jnp
from jax.experimental import pallas as pl
from jax.experimental.pallas import tpu as pltpu


_LANE_CANDIDATES = (512, 256, 128)      # lane-dense last dims (multiples of 128)
_TARGET_BLOCK_BYTES = 4 * 1024 * 1024   # ~4 MiB per block
_PALLAS_MIN_ELEMS = 1 << 20             # below ~1M elems the fused XLA path wins


def _ceil_div(a: int, b: int) -> int:
    return -(-a // b)


def _round_up(a: int, b: int) -> int:
    return _ceil_div(a, b) * b


def _log_scale(scale: str | None, dim: int, further_scale: int = 1) -> float:
    """Python-side scalar, identical to Evidence.log_scale."""
    s = 0.0
    if scale is not None and "latent-old" in scale:
        s = 0.5 * (dim * math.log(2 * math.pi) + math.log(dim + 1))
    if scale is not None and "latent-new" in scale:
        s = 0.5 * dim * math.log(4 * math.pi)
    return s + math.log(further_scale)


def _evidence_kernel(x_ref, o_ref, *, scale_const, tau, inv_tau):
    # Pure elementwise: add compile-time log-scale, optional tau*tanh(x/tau)
    # squash (reciprocal pre-folded), clamp to [-30, 30].  f32 math (free under
    # the DMA bound; avoids bf16-EUP corner cases on v5e).
    x = x_ref[...].astype(jnp.float32) + scale_const
    if tau is not None:
        x = tau * jnp.tanh(x * inv_tau)
    o_ref[...] = jnp.clip(x, -30.0, 30.0).astype(o_ref.dtype)


def _evidence_jnp(x, scale_const, tau):
    """Fused-by-XLA fallback (tiny or non-128-divisible inputs)."""
    y = x.astype(jnp.float32) + scale_const
    if tau is not None:
        y = tau * jnp.tanh(y * (1.0 / tau))
    return jnp.clip(y, -30.0, 30.0).astype(x.dtype)


def evidence_forward(log_q_c: jax.Array,
                     dim: int,
                     scale: str | None = "latent-new-plus-classes",
                     tau: float | None = None,
                     further_scale: int = 1,
                     *,
                     use_pallas: bool | None = None,
                     donate_input: bool = False) -> jax.Array:
    """Pallas implementation of Evidence.forward for any-shaped float input."""
    assert scale in ("latent-old", "latent-new", "latent-new-plus-classes", None)
    scale_const = _log_scale(scale, dim, further_scale)

    n = log_q_c.size
    dtype = log_q_c.dtype

    # Widest lane-dense last dim that divides n exactly -> pad-free reshape.
    lane = next((c for c in _LANE_CANDIDATES if n > 0 and n % c == 0), None)

    if use_pallas is None:
        use_pallas = (lane is not None) and (n >= _PALLAS_MIN_ELEMS)
    if not use_pallas or n == 0 or lane is None:
        # Never pad: tiny or ragged inputs go through XLA's fused single pass.
        return _evidence_jnp(log_q_c, scale_const, tau)

    orig_shape = log_q_c.shape
    itemsize = jnp.dtype(dtype).itemsize
    sub = max(8, 32 // itemsize)          # sublane rows per packed vreg tile
    rows = n // lane

    # Free metadata reshape (contiguous row-major) -> lane-dense 2-D slab.
    x2d = log_q_c.reshape(rows, lane)

    if rows <= sub:
        block_rows = rows                 # single full-extent block
    else:
        max_block_rows = max(
            sub, (_TARGET_BLOCK_BYTES // (lane * itemsize)) // sub * sub)
        n_blocks = _ceil_div(rows, max_block_rows)
        if rows >= 2 * sub:
            # >=2 balanced (even) blocks: keeps both v7x TensorCores busy and
            # lets the in/out DMAs pipeline against compute.
            n_blocks = max(2, n_blocks)
            n_blocks += n_blocks % 2
        block_rows = min(_round_up(_ceil_div(rows, n_blocks), sub), rows)

    grid = (_ceil_div(rows, block_rows),)

    kernel = functools.partial(
        _evidence_kernel,
        scale_const=scale_const,
        tau=tau,
        inv_tau=(None if tau is None else 1.0 / tau),
    )

    extra = {}
    if donate_input:
        # Reuse the input buffer for the output (caller must not reuse input).
        extra["input_output_aliases"] = {0: 0}

    out2d = pl.pallas_call(
        kernel,
        out_shape=jax.ShapeDtypeStruct((rows, lane), dtype),
        grid=grid,
        in_specs=[pl.BlockSpec((block_rows, lane), lambda i: (i, 0))],
        out_specs=pl.BlockSpec((block_rows, lane), lambda i: (i, 0)),
        compiler_params=pltpu.CompilerParams(
            dimension_semantics=("parallel",),      # shard rows across TCs on v7x
            vmem_limit_bytes=32 * 1024 * 1024,      # 4 MiB blocks x2 bufs x(in+out)=16 MiB
        ),
        **extra,
    )(x2d)

    return out2d.reshape(orig_shape)


def evidence_ref(log_q_c, dim, scale="latent-new-plus-classes",
                 tau=None, further_scale=1):
    """Pure-JAX reference for correctness checking (mirrors the PyTorch module)."""
    x = log_q_c + _log_scale(scale, dim, further_scale)
    if tau is not None:
        x = tau * jnp.tanh(x / tau)
    return jnp.clip(x, -30.0, 30.0)


if __name__ == "__main__":
    key = jax.random.PRNGKey(0)
    k1, k2, k3 = jax.random.split(key, 3)
    latent_dim = 16

    # Case 1: module-typical small shape [batch=8, classes=64] (512 elems).
    # Auto-dispatch -> fused jnp path; forced -> single-block Pallas path.
    small = jax.random.normal(k1, (8, 64), dtype=jnp.float32) * 10.0
    ref_small = evidence_ref(small, latent_dim, "latent-new-plus-classes", None)
    out_auto = evidence_forward(small, latent_dim)                      # jnp fallback
    out_forced = evidence_forward(small, latent_dim, use_pallas=True)   # Pallas path
    jax.block_until_ready((out_auto, out_forced))
    assert jnp.allclose(out_auto, ref_small, atol=1e-5, rtol=1e-5)
    assert jnp.allclose(out_forced, ref_small, atol=1e-5, rtol=1e-5)

    # Case 2: small slab [batch=64, classes=256] with tau squashing and
    # latent-old scale, forced through Pallas so the 2-block parallel grid runs
    # (rows=32, block_rows=16, grid=(2,)) -- pad-free, exact tiling.
    mid = jax.random.normal(k2, (64, 256), dtype=jnp.float32) * 10.0
    out_mid = evidence_forward(mid, latent_dim, scale="latent-old", tau=10.0,
                               use_pallas=True)
    jax.block_until_ready(out_mid)
    ref_mid = evidence_ref(mid, latent_dim, "latent-old", 10.0)
    assert jnp.allclose(out_mid, ref_mid, atol=1e-5, rtol=1e-5)

    # Case 3: ragged size (not a multiple of 128) -> must take the pad-free
    # jnp path (the Pallas path is never allowed to pad).
    odd = jax.random.normal(k3, (7, 33), dtype=jnp.float32) * 10.0
    out_odd = evidence_forward(odd, latent_dim, tau=5.0)
    jax.block_until_ready(out_odd)
    ref_odd = evidence_ref(odd, latent_dim, "latent-new-plus-classes", 5.0)
    assert jnp.allclose(out_odd, ref_odd, atol=1e-5, rtol=1e-5)

    print("KERNEL_OK")
</pallas_src>

<mosaic_0001>
module attributes {stable_mosaic.version = 11 : i64} {
  func.func @_evidence_kernel(%arg0: i32, %arg1: memref<1x512xf32, #tpu.memory_space<vmem>>, %arg2: memref<1x512xf32, #tpu.memory_space<vmem>>) attributes {dimension_semantics = [#tpu.dimension_semantics<parallel>], iteration_bounds = array<i64: 1>, scalar_prefetch = 0 : i64, scratch_operands = 0 : i64, tpu.core_type = #tpu.core_type<tc>, window_params = [{transform_indices = @transform_0, window_bounds = array<i64: 1, 512>}, {transform_indices = @transform_1, window_bounds = array<i64: 1, 512>}]} {
    %c0 = arith.constant 0 : index
    %c0_0 = arith.constant 0 : index
    %0 = vector.load %arg1[%c0, %c0_0] : memref<1x512xf32, #tpu.memory_space<vmem>>, vector<1x512xf32>
    %cst = arith.constant 20.2481937 : f32
    %1 = vector.broadcast %cst : f32 to vector<1x512xf32>
    %2 = arith.addf %0, %1 : vector<1x512xf32>
    %cst_1 = arith.constant -3.000000e+01 : f32
    %cst_2 = arith.constant 3.000000e+01 : f32
    %3 = vector.broadcast %cst_1 : f32 to vector<1x512xf32>
    %4 = arith.maximumf %3, %2 : vector<1x512xf32>
    %5 = vector.broadcast %cst_2 : f32 to vector<1x512xf32>
    %6 = arith.minimumf %5, %4 : vector<1x512xf32>
    %c0_3 = arith.constant 0 : index
    %c0_4 = arith.constant 0 : index
    %7 = vector.load %arg2[%c0_3, %c0_4] : memref<1x512xf32, #tpu.memory_space<vmem>>, vector<1x512xf32>
    tpu.vector_store %arg2[%c0_3, %c0_4], %6 {strides = array<i32>} : memref<1x512xf32, #tpu.memory_space<vmem>>, vector<1x512xf32>,
    return
  }
  func.func @transform_0(%arg0: i32) -> (i32, i32) {
    %c0_i32 = arith.constant 0 : i32
    %c0_i32_0 = arith.constant 0 : i32
    return %arg0, %c0_i32 : i32, i32
  }
  func.func @transform_1(%arg0: i32) -> (i32, i32) {
    %c0_i32 = arith.constant 0 : i32
    %c0_i32_0 = arith.constant 0 : i32
    return %arg0, %c0_i32 : i32, i32
  }
}

</mosaic_0001>

<bundles_post_ra>
// kernel: tpu_custom_call.1
= control target key start
LH: loop header
LB: loop body
LE: loop exit
PB: predicated region body
PF: predicated region fallthrough
CT: control target
= control target key end

     0   :  { %6 = vsyncpa [#allocation3], 0  ;;  %s110_s0 = inlined_call_operand.hbm [shape: f32[1,512], index: 0, kind: input, shape index: {}]   ;;  %s111_s1 = inlined_call_operand.hbm [shape: f32[1,512], index: 1, kind: output, shape index: {}]  }
   0x1   :  { %7 = vsyncpa [#allocation4], 0  ;;  %s92_s6 = smov [#allocation2]  }
   0x2   :  { %s14_s7 = sshll.u32 %s92_s6, 4  ;;  %s15_s7 = int_to_ptr.vmem [resolvable:$true] %s14_s7 }
   0x3   :  { %s56_s8 = scalar_lea.vmem %s15_s7, 64  ;;  %p61_p1 = scmp.lt.s32.totalorder %s15_s7, %s15_s7 }
   0x4   :  { %p57_p0 = scmp.ne.s32.totalorder %s15_s7, %s56_s8  ;;  %p62_p2 = scmp.lt.s32.totalorder %s56_s8, %s56_s8 }
   0x6   :  { %p63_p3 = por %p62_p2, %p61_p1 }
   0x8   :  { %p64_p4 = pnand %p63_p3, %p57_p0 }
   0xa   :  { %67 = shalt.err (!%p64_p4)
}
   0xb   :  { %17 = dma.hbm_to_vmem [thread:$0]  %s110_s0, 64, %s15_s7, [#allocation3]  }
   0xc   :  { %88 = dma.done.wait [#allocation3], 64  }
   0xd   :  { %89 = vsyncadd [#allocation3], 4294967232  ;;  %v25_v0 = vlaneseq  ;;  %v21_v1 = vld [vmem:[#allocation2] sm:$0xf]  ;;  %s93_s11 = smov [#allocation5]  }
   0xe   :  { %s36_s12 = sshll.u32 %s93_s11, 4  ;;  %v22_v2 = vadd.f32 20.248194, %v21_v1  ;;  %s37_s12 = int_to_ptr.vmem [resolvable:$true] %s36_s12 }
   0xf   :  { %vm27_vm0 = vcmp.lt.s32.totalorder %v25_v0, 512  ;;  %s68_s13 = scalar_lea.vmem %s37_s12, 64  ;;  %p73_p6 = scmp.lt.s32.totalorder %s37_s12, %s37_s12 }
  0x10   :  { %v45_v3 = vclamps-f32 %v22_v2, 30.0  ;;  %p69_p5 = scmp.ne.s32.totalorder %s37_s12, %s68_s13  ;;  %p74_p7 = scmp.lt.s32.totalorder %s68_s13, %s68_s13 }
  0x12   :  { %29 = vst.msk [vmem:[#allocation5] sm:$0xf] %vm27_vm0, %v45_v3  ;;  %p75_p8 = por %p74_p7, %p73_p6 }
  0x14   :  { %p76_p9 = pnand %p75_p8, %p69_p5 }
  0x16   :  { %79 = shalt.err (!%p76_p9)
}
  0x17   :  { %39 = dma.vmem_to_hbm [thread:$0]  %s37_s12, 64, %s111_s1, [#allocation4]  }
  0x18   :  { %90 = dma.done.wait [#allocation4], 64  }
  0x19   :  { %91 = vsyncadd [#allocation4], 4294967232 }
  0x1a   :  { %43 = vsyncpa [#allocation3], 1 }
  0x1b   :  { %44 = vsyncpa [#allocation4], 1 }

</bundles_post_ra>
